<compile_context>
chip_gen: v7x
topology: tpu7x:2x2x1
jax: 0.10.0
libtpu: 0.0.40
codegen_flags: <defaults>
</compile_context>

<pallas_src>
import jax
import jax.numpy as jnp
from jax.experimental import pallas as pl
from jax.experimental.pallas import tpu as pltpu

C_IN = 64
C_OUT = 10

# Below this spatial extent, batch samples per grid step instead of tiling
# the pixel axis (per-sample f32 input block would be <= 512 KiB).
_SMALL_HW = 2048
# Target input-block size for the batched (small-HW) path.
_BATCH_BLOCK_BYTES = 4 << 20
# Pixel-tile cap for the tiled (large-HW) path: 64*8192*f32 = 2 MiB per
# buffer -> ~5 MiB with double-buffering, safe under v5e's 16 MiB scoped VMEM.
_MAX_THW = 8192


def _par_kernel(x_ref, w_ref, b_ref, o_ref):
    # x_ref: (bn, 64, P)  channels on sublanes, pixels lane-dense
    # w_ref: (10, 64)     1x1 conv weight as a channel matmul (grid-resident)
    # b_ref: (10, 1)      bias (f32), broadcast along the lane (pixel) axis
    # o_ref: (bn, 10, P)
    #
    # NOTE: when the pixel axis has a partial (masked) tail block, the OOB
    # lanes read undefined data.  This is safe ONLY because there is no
    # reduction over the lane axis and OOB writes are masked by Pallas.
    w = w_ref[...]
    b = b_ref[...]
    for i in range(x_ref.shape[0]):  # static bn, unrolled at trace time
        y = jnp.dot(w, x_ref[i], preferred_element_type=jnp.float32)
        o_ref[i] = jnp.maximum(y + b, 0.0).astype(o_ref.dtype)


def _round_up(x, m):
    return ((x + m - 1) // m) * m


def _largest_divisor_at_most(n, cap):
    cap = max(1, min(cap, n))
    for d in range(cap, 0, -1):
        if n % d == 0:
            return d
    return 1


def par_forward(x_nchw, weight, bias):
    """x_nchw: (N, 64, H, W); weight: (10, 64, 1, 1); bias: (10,)."""
    N, C, H, W = x_nchw.shape
    assert C == C_IN
    HW = H * W

    # NCHW -> (N, Cin, H*W): free reshape, no transpose, dtype preserved
    # (a bf16 caller keeps bf16 X/W traffic; accumulation is f32 regardless).
    x = x_nchw.reshape(N, C_IN, HW)
    w_mat = weight.reshape(C_OUT, C_IN).astype(x.dtype)   # (10, 64)
    b_mat = bias.reshape(C_OUT, 1).astype(jnp.float32)    # (10, 1), f32 always

    itemsize = jnp.dtype(x.dtype).itemsize

    if HW <= _SMALL_HW:
        # --- batched path: several samples per grid step, full pixel extent ---
        per_sample = C_IN * HW * itemsize
        bn_cap = max(1, _BATCH_BLOCK_BYTES // per_sample)
        if N >= 2:
            bn_cap = min(bn_cap, max(1, N // 2))  # >= 2 steps for v7x's 2 TCs
        bn = _largest_divisor_at_most(N, bn_cap)  # exact batch split, no tail
        grid = (N // bn,)
        in_specs = [
            pl.BlockSpec((bn, C_IN, HW), lambda i: (i, 0, 0)),
            pl.BlockSpec((C_OUT, C_IN), lambda i: (0, 0)),
            pl.BlockSpec((C_OUT, 1), lambda i: (0, 0)),
        ]
        out_spec = pl.BlockSpec((bn, C_OUT, HW), lambda i: (i, 0, 0))
        dim_sem = ("parallel",)
    else:
        # --- tiled path: tile the pixel axis, cdiv grid with masked tail ---
        thw = min(_MAX_THW, (HW // 128) * 128)     # >= 1920, multiple of 128
        if N == 1 and pl.cdiv(HW, thw) < 2:
            # Split the single block so both v7x TensorCores get work.
            thw = _round_up((HW + 1) // 2, 128)
        grid = (N, pl.cdiv(HW, thw))
        in_specs = [
            pl.BlockSpec((1, C_IN, thw), lambda n, j: (n, 0, j)),
            pl.BlockSpec((C_OUT, C_IN), lambda n, j: (0, 0)),
            pl.BlockSpec((C_OUT, 1), lambda n, j: (0, 0)),
        ]
        out_spec = pl.BlockSpec((1, C_OUT, thw), lambda n, j: (n, 0, j))
        dim_sem = ("parallel", "parallel")

    cost = pl.CostEstimate(
        flops=2 * N * HW * C_IN * C_OUT,
        transcendentals=0,
        bytes_accessed=itemsize * N * HW * (C_IN + C_OUT)
        + itemsize * C_IN * C_OUT + 4 * C_OUT,
    )

    out = pl.pallas_call(
        _par_kernel,
        out_shape=jax.ShapeDtypeStruct((N, C_OUT, HW), x.dtype),
        grid_spec=pltpu.PrefetchScalarGridSpec(
            num_scalar_prefetch=0,
            grid=grid,
            in_specs=in_specs,
            out_specs=out_spec,
        ),
        compiler_params=pltpu.CompilerParams(dimension_semantics=dim_sem),
        cost_estimate=cost,
    )(x, w_mat, b_mat)

    # (N, Cout, H*W) -> NCHW: free reshape, no slice needed (no padding).
    return out.reshape(N, C_OUT, H, W)


def _reference(x_nchw, weight, bias):
    # Plain-JAX reference of Conv2d(64, 10, 1) + ReLU.
    w = weight.reshape(C_OUT, C_IN)
    y = jnp.einsum("nchw,oc->nohw", x_nchw, w) + bias[None, :, None, None]
    return jnp.maximum(y, 0.0)


if __name__ == "__main__":
    key = jax.random.PRNGKey(0)
    kx, kw, kb, kx2 = jax.random.split(key, 4)

    # Deterministic parameter init (PyTorch-default-like uniform bound).
    bound = 1.0 / (C_IN ** 0.5)
    weight = jax.random.uniform(kw, (C_OUT, C_IN, 1, 1), jnp.float32, -bound, bound)
    bias = jax.random.uniform(kb, (C_OUT,), jnp.float32, -bound, bound)

    # Case 1: small spatial extent (batched path), N=2, 8x8.
    x = jax.random.normal(kx, (2, C_IN, 8, 8), dtype=jnp.float32)
    out = jax.block_until_ready(par_forward(x, weight, bias))
    ref = _reference(x, weight, bias)
    assert out.shape == (2, C_OUT, 8, 8)
    assert jnp.allclose(out, ref, atol=1e-5, rtol=1e-5)

    # Case 2: exercises the tiled path with a masked partial tail block
    # (HW = 46*46 = 2116 -> thw = 2048, 2 pixel tiles, last one partial).
    x2 = jax.random.normal(kx2, (1, C_IN, 46, 46), dtype=jnp.float32)
    out2 = jax.block_until_ready(par_forward(x2, weight, bias))
    ref2 = _reference(x2, weight, bias)
    assert out2.shape == (1, C_OUT, 46, 46)
    assert jnp.allclose(out2, ref2, atol=1e-5, rtol=1e-5)

    print("KERNEL_OK")
</pallas_src>

<mosaic_0001>
module attributes {stable_mosaic.version = 11 : i64} {
  func.func @_par_kernel(%arg0: i32, %arg1: memref<1x64x64xf32, #tpu.memory_space<vmem>>, %arg2: memref<10x64xf32, #tpu.memory_space<vmem>>, %arg3: memref<10x1xf32, #tpu.memory_space<vmem>>, %arg4: memref<1x10x64xf32, #tpu.memory_space<vmem>>) attributes {dimension_semantics = [#tpu.dimension_semantics<parallel>], iteration_bounds = array<i64: 2>, scalar_prefetch = 0 : i64, scratch_operands = 0 : i64, tpu.core_type = #tpu.core_type<tc>, window_params = [{transform_indices = @transform_0, window_bounds = array<i64: 1, 64, 64>}, {pipeline_mode = #tpu.pipeline_mode<synchronous>, transform_indices = @transform_1, window_bounds = array<i64: 10, 64>}, {pipeline_mode = #tpu.pipeline_mode<synchronous>, transform_indices = @transform_2, window_bounds = array<i64: 10, 1>}, {transform_indices = @transform_3, window_bounds = array<i64: 1, 10, 64>}]} {
    %c0 = arith.constant 0 : index
    %c0_0 = arith.constant 0 : index
    %0 = vector.load %arg2[%c0, %c0_0] : memref<10x64xf32, #tpu.memory_space<vmem>>, vector<10x64xf32>
    %c0_1 = arith.constant 0 : index
    %c0_2 = arith.constant 0 : index
    %1 = vector.load %arg3[%c0_1, %c0_2] : memref<10x1xf32, #tpu.memory_space<vmem>>, vector<10x1xf32>
    %c0_3 = arith.constant 0 : index
    %c0_4 = arith.constant 0 : index
    %c0_5 = arith.constant 0 : index
    %2 = vector.load %arg1[%c0_3, %c0_4, %c0_5] : memref<1x64x64xf32, #tpu.memory_space<vmem>>, vector<1x64x64xf32>
    %3 = vector.shape_cast %2 : vector<1x64x64xf32> to vector<64x64xf32>
    %cst = arith.constant dense<0.000000e+00> : vector<10x64xf32>
    %4 = tpu.matmul %0, %3, %cst {dimension_numbers = #tpu.dot_dimension_numbers<[1], [0], [0], [1], [0, 0, 1, 1], [], []>} : vector<10x64xf32>, vector<64x64xf32>, vector<10x64xf32> -> vector<10x64xf32>
    %5 = vector.broadcast %1 : vector<10x1xf32> to vector<10x64xf32>
    %6 = arith.addf %4, %5 : vector<10x64xf32>
    %cst_6 = arith.constant 0.000000e+00 : f32
    %7 = vector.broadcast %cst_6 : f32 to vector<10x64xf32>
    %8 = arith.maximumf %6, %7 : vector<10x64xf32>
    %c0_7 = arith.constant 0 : index
    %c0_8 = arith.constant 0 : index
    %c0_9 = arith.constant 0 : index
    %9 = vector.load %arg4[%c0_7, %c0_8, %c0_9] : memref<1x10x64xf32, #tpu.memory_space<vmem>>, vector<1x10x64xf32>
    %10 = vector.shape_cast %9 : vector<1x10x64xf32> to vector<10x64xf32>
    %11 = vector.shape_cast %8 : vector<10x64xf32> to vector<1x10x64xf32>
    tpu.vector_store %arg4[%c0_7, %c0_8, %c0_9], %11 {strides = array<i32>} : memref<1x10x64xf32, #tpu.memory_space<vmem>>, vector<1x10x64xf32>,
    return
  }
  func.func @transform_0(%arg0: i32) -> (i32, i32, i32) {
    %c0_i32 = arith.constant 0 : i32
    %c0_i32_0 = arith.constant 0 : i32
    %c0_i32_1 = arith.constant 0 : i32
    return %arg0, %c0_i32, %c0_i32_0 : i32, i32, i32
  }
  func.func @transform_1(%arg0: i32) -> (i32, i32) {
    %c0_i32 = arith.constant 0 : i32
    %c0_i32_0 = arith.constant 0 : i32
    %c0_i32_1 = arith.constant 0 : i32
    return %c0_i32, %c0_i32_0 : i32, i32
  }
  func.func @transform_2(%arg0: i32) -> (i32, i32) {
    %c0_i32 = arith.constant 0 : i32
    %c0_i32_0 = arith.constant 0 : i32
    %c0_i32_1 = arith.constant 0 : i32
    return %c0_i32, %c0_i32_0 : i32, i32
  }
  func.func @transform_3(%arg0: i32) -> (i32, i32, i32) {
    %c0_i32 = arith.constant 0 : i32
    %c0_i32_0 = arith.constant 0 : i32
    %c0_i32_1 = arith.constant 0 : i32
    return %arg0, %c0_i32, %c0_i32_0 : i32, i32, i32
  }
}

</mosaic_0001>

<bundles_post_ra>
// kernel: tpu_custom_call.1
= control target key start
LH: loop header
LB: loop body
LE: loop exit
PB: predicated region body
PF: predicated region fallthrough
CT: control target
= control target key end

     0   :  { %8 = vsyncpa [#allocation3], 0  ;;  %s684_s0 = inlined_call_operand.hbm [shape: f32[2,64,64], index: 0, kind: input, shape index: {}]   ;;  %s685_s1 = inlined_call_operand.vmem [shape: f32[10,64], index: 1, kind: input, shape index: {}]   ;;  %s686_s2 = inlined_call_operand.vmem [shape: f32[10,1], index: 2, kind: input, shape index: {}]   ;;  %s687_s3 = inlined_call_operand.vmem [shape: f32[2,10,64], index: 3, kind: output, shape index: {}]  }
   0x1   :  { %10 = vsyncpa [#allocation3 + $0x1], 0  ;;  %s561_s12 = smov 0   ;;  %s563_s13 = smov 0  }
   0x2   :  { %s565_s14 = smov 0   ;;  %s567_s15 = smov 0  }
   0x3 LB: > { %s580_s16 = sadd.s32 4294967295, %s535_s15   ;;  %s583_s17 = sadd.s32 1, %s535_s15   ;;  %s535_s15 = sphi %s567_s15, %s694_s15   ;;  %s531_s14 = sphi %s565_s14, %s693_s14   ;;  %s527_s13 = sphi %s563_s13, %s692_s13   ;;  %s523_s12 = sphi %s561_s12, %s691_s12  }
   0x4   : > { %s20_s18 = ssub.s32 %s535_s15, %s583_s17  ;;  %s23_s19 = sadd.s32 1, %s531_s14 }
   0x5   : > { %p21_p0 = scmp.eq.s32.totalorder %s20_s18, 0  ;;  %p30_p1 = scmp.ne.s32.totalorder %s531_s14, %s527_s13 }
   0x6   : > { %p31_p2 = scmp.eq.s32.totalorder %s535_s15, 0  ;;  %p36_p3 = scmp.ne.s32.totalorder %s527_s13, %s523_s12 }
   0x7   : > { %s593_s20 = scalar_select %p21_p0, %s531_s14, %s23_s19  }
   0x8   : > { %p32_p4 = por %p31_p2, %p30_p1  ;;  %p37_p5 = scmp.eq.s32.totalorder %s580_s16, 0 }
   0x9   : > { %p434_p6 = scmp.lt.s32.totalorder %s535_s15, 2  ;;  %s134_s22 = sand.u32 1, %s531_s14  }
   0xa   : > { %p597_p7 = por %p37_p5, %p36_p3  ;;  %s370_s23 = sshll.u32 %s134_s22, 6 }
   0xb   : > { %s381_s24 = sshll.u32 %s535_s15, 10  ;;  %s138_s28 = scalar_lea.vmem [#allocation2], %s370_s23 }
   0xc   : > { %s606_s27 = scalar_lea.hbm %s684_s0, %s381_s24  ;;  %s145_s29 = sshll.u32 %s138_s28, 4  ;;  %s608_s29 = int_to_ptr.vmem [resolvable:$true] %s145_s29 }
   0xd   : > { %p610_p8 = pnand %p434_p6, %p32_p4  ;;  %s615_s4 = scalar_lea.sflag [#allocation3], %s134_s22 }
   0xe   : > { %s471_s5 = scalar_lea.hbm %s606_s27, 1024  ;;  %s476_s8 = scalar_lea.hbm %s684_s0, 2048 }
   0xf   : > { %p472_p10 = scmp.ne.s32.totalorder %s606_s27, %s471_s5  ;;  %p473_p11 = pneg %p610_p8 }
  0x10   : > { %p477_p0 = scmp.lt.u32.totalorder %s606_s27, %s684_s0  ;;  %p478_p1 = scmp.lt.u32.totalorder %s476_s8, %s471_s5 }
  0x11   : > { %p474_p12 = pnand %p473_p11, %p472_p10  ;;  %p480_p3 = scmp.lt.u32.totalorder %s471_s5, %s606_s27 }
  0x12   : > { %p479_p2 = por %p478_p1, %p477_p0 }
  0x13   : > { %p475_p13 = pneg %p474_p12 }
  0x14   : > { %p481_p4 = por %p480_p3, %p479_p2 }
  0x16   : > { %p482_p5 = pnand %p481_p4, %p475_p13 }
  0x18   : > { %485 = shalt.err (!%p482_p5)
}
  0x19   : > { %s486_s11 = scalar_lea.vmem %s608_s29, 1024  ;;  %s537_s12 = smov [#allocation2]  }
  0x1a   : > { %p487_p6 = scmp.ne.s32.totalorder %s608_s29, %s486_s11  ;;  %s491_s18 = sshll.u32 %s537_s12, 4  ;;  %s492_s18 = int_to_ptr.vmem [resolvable:$false] %s491_s18 }
  0x1b   : > { %s493_s19 = scalar_lea.vmem %s492_s18, 2048  ;;  %p494_p9 = scmp.lt.s32.totalorder %s608_s29, %s492_s18 }
  0x1c   : > { %p489_p10 = pnand %p487_p6, %p473_p11  ;;  %p495_p0 = scmp.lt.s32.totalorder %s493_s19, %s486_s11 }
  0x1e   : > { %p490_p12 = pneg %p489_p10  ;;  %p496_p1 = por %p495_p0, %p494_p9 }
  0x20   : > { %p497_p2 = pnand %p496_p1, %p490_p12 }
  0x22   : > { %500 = shalt.err (!%p497_p2)
}
  0x23   : > { %s538_s22 = smov 128   ;;  %s539_s23 = smov 8  }
  0x24   : > { %433 = dma.hbm_to_vmem [thread:$0]  (!%p610_p8), %s606_s27, 1024, %s608_s29, %s615_s4, %s538_s22, %s538_s22, %s539_s23  }
  0x25   : > { %p153_p11 = scmp.lt.s32.totalorder %s535_s15, 3  ;;  %p690_p13 = scmp.ge.s32.totalorder %s535_s15, 1 }
  0x27   : > { %p154_p3 = pnand %p690_p13, %p153_p11 }
  0x28   : > { %s159_s24 = sand.u32 (!%p154_p3), 1, %s527_s13  }
  0x29   : > { %157 = sbr.rel (%p154_p3) target bundleno = 286 (0x11e), region = 32  ;;  %s374_s25 = sshll.u32 (!%p154_p3), %s159_s24, 6 }
  0x2a   : > { %s160_s26 = scalar_lea.sflag (!%p154_p3), [#allocation3], %s159_s24  ;;  %s163_s28 = scalar_lea.vmem (!%p154_p3), [#allocation2], %s374_s25 }
  0x30   : > { %518 = dma.done.wait (%p597_p7), %s160_s26, 1024  }
  0x31   : > { %520 = vsyncadd (%p597_p7), %s160_s26, 4294966272  ;;  %v540_v0 = vmov 0   ;;  %v195_v1 = vld [vmem:[%s163_s28] sm:$0xff]  ;;  %v196_v2 = vld [vmem:[%s163_s28 + $0x8] sm:$0xff]  ;;  %vm213_vm0 = vcmask 523264   ;;  %p186_p7 = scmp.lt.s32.totalorder %s580_s16, 1 }
  0x32   : > { %470 = vset.pattern.permute.xlu0 %v540_v0  ;;  %v197_v3 = vld [vmem:[%s163_s28 + $0x10] sm:$0xff]  ;;  %v412_v4 = vpack.c.bf16 %v196_v2, %v195_v1  ;;  %v198_v5 = vld [vmem:[%s163_s28 + $0x18] sm:$0xff]  ;;  %v199_v7 = vld [vmem:[%s163_s28 + $0x20] sm:$0xff]  ;;  %vm298_vm1 = vcmask 517120  }
  0x33   : > { %v416_v6 = vpack.c.bf16 %v198_v5, %v197_v3  ;;  %v200_v8 = vld [vmem:[%s163_s28 + $0x28] sm:$0xff]  ;;  %v191_v9 = vld [vmem:[%s685_s1] sm:$0xff]  ;;  %v201_v13 = vld [vmem:[%s163_s28 + $0x30] sm:$0xff]  ;;  %s696_s16 = smov (!%p186_p7, %s580_s16), 1 }
  0x34   : > { %413 = vmatprep.subr.bf16.mxu0 %v412_v4  ;;  %409 = vmatprep.mubr.msk.f32.mxu0 %vm213_vm0, %v191_v9  ;;  %v193_v10 = vld [vmem:[%s686_s2] sm:$0xff]  ;;  %v420_v11 = vpack.c.bf16 %v200_v8, %v199_v7  ;;  %v194_v12 = vld [vmem:[%s686_s2 + $0x8] sm:$0x3]  ;;  %v202_v14 = vld [vmem:[%s163_s28 + $0x38] sm:$0xff]  ;;  %s382_s7 = sshll.u32 %s696_s16, 4 }
  0x35   : > { %415 = vmatpush3.bf16.msra.mxu0 %v412_v4  ;;  %205 = vperm.xlu0 %470, %v193_v10   ;;  %v424_v15 = vpack.c.bf16 %v202_v14, %v201_v13  ;;  %v192_v16 = vld [vmem:[%s685_s1 + $0x8] sm:$0x3]  ;;  %s190_s10 = scalar_lea.vmem %s687_s3, %s382_s7 }
  0x36   : > { %417 = vmatprep.subr.bf16.mxu0 %v416_v6 }
  0x39   : > { %419 = vmatpush3.bf16.msra.mxu0 %v416_v6  ;;  %210 = vperm.xlu0 %470, %v194_v12  }
  0x3a   : > { %421 = vmatprep.subr.bf16.mxu0 %v420_v11 }
  0x3d   : > { %423 = vmatpush3.bf16.msra.mxu0 %v420_v11 }
  0x3e   : > { %425 = vmatprep.subr.bf16.mxu0 %v424_v15 }
  0x41   : > { %427 = vmatpush3.bf16.msra.mxu0 %v424_v15 }
  0x44   : > { %410 = vmatmul.mubr.msk.f32.vlgmr.msra.gmra.mrb[0].mxu0 %vm213_vm0, %v192_v16 }
  0xb4   : > { %v206_v17 = vpop.permute.xlu0 %205 }
  0xb8   : > { %v211_v18 = vpop.permute.xlu0 %210 }
 0x117   : > { %v411_v19 = vpop.f32.mrb[0].mxu0 }
 0x118   : > { %v292_v20 = vadd.f32 %v411_v19, %v211_v18  ;;  %v286_v21 = vpop.f32.mrb[1].mxu0 }
 0x119   : > { %v287_v22 = vadd.f32 %v286_v21, %v206_v17 }
 0x11a   : > { %v296_v23 = vmax.f32 %v292_v20, 0.0 }
 0x11b   : > { %v295_v24 = vmax.f32 %v287_v22, 0.0 }
 0x11c   : > { %299 = vst.msk [vmem:[%s190_s10 + $0x8] sm:$0x3] %vm298_vm1, %v296_v23 }
 0x11d   : > { %297 = vst.msk [vmem:[%s190_s10] sm:$0xff] %vm213_vm0, %v295_v24 }
 0x11e PF: > { %p13_p8 = scmp.ge.s32.totalorder %s583_s17, 4   ;;  %s691_s12 = smov %s527_s13 }
 0x11f   : > { %s692_s13 = smov %s531_s14  ;;  %s693_s14 = smov %s593_s20 }
 0x120   : > { %s694_s15 = smov %s583_s17  ;;  %15 = sbr.rel (!%p13_p8) target bundleno = 3 (0x3), region = 72 }
 0x127   :  { %321 = vsyncpa [#allocation3], 1 }
 0x128   :  { %323 = vsyncpa [#allocation3 + $0x1], 1 }

</bundles_post_ra>
